<compile_context>
chip_gen: v7x
topology: tpu7x:2x2x1
jax: 0.10.0
libtpu: 0.0.40
codegen_flags: <defaults>
</compile_context>

<pallas_src>
import math

import jax
import jax.numpy as jnp
from jax.experimental import pallas as pl
from jax.experimental.pallas import tpu as pltpu


def _affine_kernel(gamma_ref, beta_ref, x_ref, o_ref):
    # Elementwise hot path on the VPU: broadcast (1, lane_tile) params over
    # (row_tile, lane_tile). Purely mem-bound filler work.
    x = x_ref[...].astype(o_ref.dtype)
    o_ref[...] = x * gamma_ref[...] + beta_ref[...]


def _choose_lane_fold(rows, num_features, max_lane=4096):
    """Pick a fold factor k so (rows, F) -> (rows/k, k*F) is lane-dense.

    k is always a multiple of k_min = 128 / gcd(F, 128), i.e. (k*F) % 128 == 0,
    so vector stores are unmasked full-lane vst.  If `rows` is divisible by
    k_min we pick the largest divisor of `rows` (no padding); otherwise we pick
    a k giving >= ~512 lanes and the caller pads `rows` up to a multiple of k.
    Returns 1 (no fold) when F is already too wide to fold sensibly.
    """
    k_min = 128 // math.gcd(num_features, 128)
    if k_min * num_features > max_lane:
        # F itself is already very wide (mostly lane-dense); don't fold.
        return 1
    if rows % k_min == 0:
        best = k_min
        k = k_min
        while k * num_features <= max_lane:
            if rows % k == 0:
                best = k
            k += k_min
        return best
    # rows has no 128-aligning divisor: caller will pad a few rows.
    k = k_min
    while k * num_features < 512 and 2 * k * num_features <= max_lane:
        k *= 2
    return k


def affine_transformation(x, gamma, beta, *, donate_x=False):
    """Apply y = gamma * x + beta along the last axis of x via a Pallas kernel.

    x:     (..., num_features)
    gamma: (num_features,)
    beta:  (num_features,)
    """
    orig_shape = x.shape
    num_features = orig_shape[-1]
    assert gamma.shape == (num_features,)
    assert beta.shape == (num_features,)

    # Match jnp/torch promotion semantics (e.g. bf16 x with f32 params -> f32).
    out_dtype = jnp.result_type(x.dtype, gamma.dtype, beta.dtype)

    if x.size == 0:  # zero-sized leading dim (or num_features == 0)
        return jnp.zeros(orig_shape, out_dtype)

    rows = math.prod(orig_shape[:-1])  # product of leading dims (1 if none)

    # ---- lane folding: (rows, F) -> (R, L) with L = k*F lane-dense ---------
    k = _choose_lane_fold(rows, num_features)
    rows_padded = pl.cdiv(rows, k) * k
    x2d = x.reshape(rows, num_features)
    if rows_padded != rows:
        # Rare fallback (rows has no 128-aligning divisor): pad a few rows so
        # the output stays lane-dense, then slice the pad off afterwards.
        x2d = jnp.pad(x2d, ((0, rows_padded - rows), (0, 0)))
    R = rows_padded // k
    L = k * num_features
    x2d = x2d.reshape(R, L)  # contiguous collapse: metadata-only when unpadded

    gamma_l = jnp.tile(gamma.astype(out_dtype), k).reshape(1, L)
    beta_l = jnp.tile(beta.astype(out_dtype), k).reshape(1, L)

    # ---- block sizing --------------------------------------------------------
    # 8 MiB x / out blocks: 2x(in) + 2x(out) double-buffered = 32 MiB, inside a
    # 48 MiB scoped-VMEM budget on every chip (v7x 64 MiB physical, v5e/v6e
    # 128 MiB).  At v7x's 3.2 TB/s a block is ~2.5 us read+write, so the
    # ~0.35 us per-step overhead stays <5%.
    MAX_BLOCK_BYTES = 8 * 1024 * 1024
    # Keep >= ~8 steps along the row grid axis so the pipeline actually
    # overlaps DMA-in / compute / DMA-out and v7x can split rows across its
    # two TensorCores; extra steps are essentially free (~0.35 us each).
    MIN_ROW_STEPS = 8

    in_itemsize = jnp.dtype(x.dtype).itemsize
    out_itemsize = jnp.dtype(out_dtype).itemsize
    size_itemsize = max(in_itemsize, out_itemsize)
    # Native packed sublane tile: 8 rows (32-bit), 16 (bf16), 32 (int8/fp8).
    sub = 8 * max(1, 4 // min(in_itemsize, out_itemsize))

    if L * size_itemsize * sub > MAX_BLOCK_BYTES:
        # Very wide (folded) feature axis: tile the lane dimension too.
        lane_tile = max(128, (MAX_BLOCK_BYTES // (sub * size_itemsize)) // 128 * 128)
        lane_tile = min(lane_tile, L)
        row_tile = min(R, sub)
    else:
        lane_tile = L
        row_tile = min(MAX_BLOCK_BYTES // (L * size_itemsize),
                       pl.cdiv(R, MIN_ROW_STEPS))
        if R < sub:
            row_tile = R  # full row extent (legal: equals the array dim)
        else:
            row_tile = max(sub, (row_tile // sub) * sub)  # packed-tile multiple
            row_tile = min(row_tile, R)

    grid = (pl.cdiv(R, row_tile), pl.cdiv(L, lane_tile))

    extra_kwargs = {}
    if donate_x and jnp.dtype(x.dtype) == jnp.dtype(out_dtype):
        # Reuse x's buffer for the output when the caller donates it (halves
        # HBM footprint inside larger jitted graphs; bandwidth is unchanged).
        extra_kwargs["input_output_aliases"] = {2: 0}

    out2d = pl.pallas_call(
        _affine_kernel,
        out_shape=jax.ShapeDtypeStruct((R, L), out_dtype),
        grid_spec=pltpu.PrefetchScalarGridSpec(
            num_scalar_prefetch=0,
            grid=grid,
            in_specs=[
                # gamma / beta: tiny (1, lane_tile) blocks whose block index
                # depends only on the lane axis; in the common lane_tile == L
                # case they stay resident in VMEM across every row step.
                pl.BlockSpec((1, lane_tile), lambda i, j: (0, j)),
                pl.BlockSpec((1, lane_tile), lambda i, j: (0, j)),
                # x: big lane-dense tiles.
                pl.BlockSpec((row_tile, lane_tile), lambda i, j: (i, j)),
            ],
            out_specs=pl.BlockSpec((row_tile, lane_tile), lambda i, j: (i, j)),
        ),
        compiler_params=pltpu.CompilerParams(
            # Purely elementwise -> both axes independent; megacore shards the
            # (multi-step) row axis across v7x's two TensorCores.
            dimension_semantics=("parallel", "parallel"),
            # 32 MiB of double-buffered blocks + headroom: fits v7x's 64 MiB
            # physical VMEM and overrides v5e's 16 MiB default scoped limit.
            vmem_limit_bytes=48 << 20,
        ),
        **extra_kwargs,
    )(gamma_l, beta_l, x2d)

    out = out2d.reshape(rows_padded, num_features)[:rows]
    return out.reshape(orig_shape)


if __name__ == "__main__":
    key = jax.random.PRNGKey(0)
    k_x, k_g, k_b, k_x2 = jax.random.split(key, 4)

    batch, seq, num_features = 2, 8, 32
    x = jax.random.normal(k_x, (batch, seq, num_features), dtype=jnp.float32)

    # Module init is gamma=ones, beta=zeros; perturb deterministically so the
    # affine transform is non-trivial.
    gamma = jnp.ones((num_features,), dtype=jnp.float32) \
        + 0.1 * jax.random.normal(k_g, (num_features,), dtype=jnp.float32)
    beta = jnp.zeros((num_features,), dtype=jnp.float32) \
        + 0.1 * jax.random.normal(k_b, (num_features,), dtype=jnp.float32)

    y = jax.block_until_ready(affine_transformation(x, gamma, beta))
    y_ref = gamma * x + beta
    assert y.shape == x.shape
    assert y.dtype == y_ref.dtype
    assert jnp.allclose(y, y_ref, atol=1e-6, rtol=1e-6)

    # Ragged row count (rows=15 has no 128-aligning divisor for F=32):
    # exercises the padded lane-dense fallback path.
    x2 = jax.random.normal(k_x2, (3, 5, num_features), dtype=jnp.float32)
    y2 = jax.block_until_ready(affine_transformation(x2, gamma, beta))
    assert jnp.allclose(y2, gamma * x2 + beta, atol=1e-6, rtol=1e-6)

    print("KERNEL_OK")
</pallas_src>

<mosaic_0001>
module attributes {stable_mosaic.version = 11 : i64} {
  func.func @_affine_kernel(%arg0: i32, %arg1: i32, %arg2: memref<1x512xf32, #tpu.memory_space<vmem>>, %arg3: memref<1x512xf32, #tpu.memory_space<vmem>>, %arg4: memref<1x512xf32, #tpu.memory_space<vmem>>, %arg5: memref<1x512xf32, #tpu.memory_space<vmem>>) attributes {dimension_semantics = [#tpu.dimension_semantics<parallel>, #tpu.dimension_semantics<parallel>], iteration_bounds = array<i64: 1, 1>, scalar_prefetch = 0 : i64, scratch_operands = 0 : i64, tpu.core_type = #tpu.core_type<tc>, window_params = [{transform_indices = @transform_0, window_bounds = array<i64: 1, 512>}, {transform_indices = @transform_1, window_bounds = array<i64: 1, 512>}, {transform_indices = @transform_2, window_bounds = array<i64: 1, 512>}, {transform_indices = @transform_3, window_bounds = array<i64: 1, 512>}]} {
    %c0 = arith.constant 0 : index
    %c0_0 = arith.constant 0 : index
    %0 = vector.load %arg4[%c0, %c0_0] : memref<1x512xf32, #tpu.memory_space<vmem>>, vector<1x512xf32>
    %c0_1 = arith.constant 0 : index
    %c0_2 = arith.constant 0 : index
    %1 = vector.load %arg2[%c0_1, %c0_2] : memref<1x512xf32, #tpu.memory_space<vmem>>, vector<1x512xf32>
    %2 = arith.mulf %0, %1 : vector<1x512xf32>
    %c0_3 = arith.constant 0 : index
    %c0_4 = arith.constant 0 : index
    %3 = vector.load %arg3[%c0_3, %c0_4] : memref<1x512xf32, #tpu.memory_space<vmem>>, vector<1x512xf32>
    %4 = arith.addf %2, %3 : vector<1x512xf32>
    %c0_5 = arith.constant 0 : index
    %c0_6 = arith.constant 0 : index
    %5 = vector.load %arg5[%c0_5, %c0_6] : memref<1x512xf32, #tpu.memory_space<vmem>>, vector<1x512xf32>
    tpu.vector_store %arg5[%c0_5, %c0_6], %4 {strides = array<i32>} : memref<1x512xf32, #tpu.memory_space<vmem>>, vector<1x512xf32>,
    return
  }
  func.func @transform_0(%arg0: i32, %arg1: i32) -> (i32, i32) {
    %c0_i32 = arith.constant 0 : i32
    %c0_i32_0 = arith.constant 0 : i32
    return %c0_i32, %arg1 : i32, i32
  }
  func.func @transform_1(%arg0: i32, %arg1: i32) -> (i32, i32) {
    %c0_i32 = arith.constant 0 : i32
    %c0_i32_0 = arith.constant 0 : i32
    return %c0_i32, %arg1 : i32, i32
  }
  func.func @transform_2(%arg0: i32, %arg1: i32) -> (i32, i32) {
    %c0_i32 = arith.constant 0 : i32
    return %arg0, %arg1 : i32, i32
  }
  func.func @transform_3(%arg0: i32, %arg1: i32) -> (i32, i32) {
    %c0_i32 = arith.constant 0 : i32
    return %arg0, %arg1 : i32, i32
  }
}

</mosaic_0001>

<bundles_post_ra>
// kernel: tpu_custom_call.1
= control target key start
LH: loop header
LB: loop body
LE: loop exit
PB: predicated region body
PF: predicated region fallthrough
CT: control target
= control target key end

     0   :  { %8 = vsyncpa [#allocation3], 0  ;;  %s202_s0 = inlined_call_operand.hbm [shape: f32[1,512], index: 0, kind: input, shape index: {}]   ;;  %s203_s1 = inlined_call_operand.hbm [shape: f32[1,512], index: 1, kind: input, shape index: {}]   ;;  %s204_s2 = inlined_call_operand.vmem [shape: f32[1,512], index: 2, kind: input, shape index: {}]   ;;  %s205_s3 = inlined_call_operand.hbm [shape: f32[1,512], index: 3, kind: output, shape index: {}]  }
   0x1   :  { %9 = vsyncpa [#allocation6], 0 }
   0x2   :  { %10 = vsyncpa [#allocation4], 0  ;;  %s140_s12 = smov [#allocation2]   ;;  %s141_s14 = smov [#allocation5]  }
   0x3   :  { %s17_s13 = sshll.u32 %s140_s12, 4  ;;  %s27_s15 = sshll.u32 %s141_s14, 4  ;;  %s18_s13 = int_to_ptr.vmem [resolvable:$true] %s17_s13  ;;  %s28_s15 = int_to_ptr.vmem [resolvable:$true] %s27_s15 }
   0x4   :  { %s68_s18 = scalar_lea.hbm %s202_s0, 64 }
   0x5   :  { %p69_p0 = scmp.ne.s32.totalorder %s202_s0, %s68_s18  ;;  %p72_p1 = scmp.lt.u32.totalorder %s68_s18, %s202_s0 }
   0x7   :  { %p74_p2 = pnand %p72_p1, %p69_p0 }
   0x9   :  { %77 = shalt.err (!%p74_p2)
}
   0xa   :  { %s78_s23 = scalar_lea.vmem %s18_s13, 64  ;;  %p83_p4 = scmp.lt.s32.totalorder %s18_s13, %s18_s13 }
   0xb   :  { %p79_p3 = scmp.ne.s32.totalorder %s18_s13, %s78_s23  ;;  %p84_p5 = scmp.lt.s32.totalorder %s78_s23, %s78_s23 }
   0xd   :  { %p85_p6 = por %p84_p5, %p83_p4 }
   0xf   :  { %p86_p7 = pnand %p85_p6, %p79_p3 }
  0x11   :  { %89 = shalt.err (!%p86_p7)
}
  0x12   :  { %20 = dma.hbm_to_vmem [thread:$0]  %s202_s0, 64, %s18_s13, [#allocation3]  }
  0x13   :  { %s90_s28 = scalar_lea.hbm %s203_s1, 64 }
  0x14   :  { %p91_p8 = scmp.ne.s32.totalorder %s203_s1, %s90_s28  ;;  %p94_p9 = scmp.lt.u32.totalorder %s90_s28, %s203_s1 }
  0x16   :  { %p96_p10 = pnand %p94_p9, %p91_p8 }
  0x18   :  { %99 = shalt.err (!%p96_p10)
}
  0x19   :  { %s100_s6 = scalar_lea.vmem %s28_s15, 64  ;;  %p105_p12 = scmp.lt.s32.totalorder %s28_s15, %s28_s15 }
  0x1a   :  { %p101_p11 = scmp.ne.s32.totalorder %s28_s15, %s100_s6  ;;  %p106_p13 = scmp.lt.s32.totalorder %s100_s6, %s100_s6 }
  0x1c   :  { %p107_p0 = por %p106_p13, %p105_p12 }
  0x1e   :  { %p108_p1 = pnand %p107_p0, %p101_p11 }
  0x20   :  { %111 = shalt.err (!%p108_p1)
}
  0x21   :  { %30 = dma.hbm_to_vmem [thread:$0]  %s203_s1, 64, %s28_s15, [#allocation6]  }
  0x22   :  { %134 = dma.done.wait [#allocation3], 64  }
  0x23   :  { %135 = vsyncadd [#allocation3], 4294967232 }
  0x24   :  { %136 = dma.done.wait [#allocation6], 64  }
  0x25   :  { %137 = vsyncadd [#allocation6], 4294967232  ;;  %v44_v0 = vlaneseq  ;;  %s142_s8 = smov [#allocation7]   ;;  %v39_v1 = vld [vmem:[%s204_s2] sm:$0xf] }
  0x26   :  { %s55_s9 = sshll.u32 %s142_s8, 4  ;;  %v40_v2 = vld [vmem:[#allocation2] sm:$0xf]  ;;  %v42_v3 = vld [vmem:[#allocation5] sm:$0xf]  ;;  %s56_s9 = int_to_ptr.vmem [resolvable:$true] %s55_s9 }
  0x27   :  { %v41_v4 = vmul.f32 %v40_v2, %v39_v1  ;;  %vm46_vm0 = vcmp.lt.s32.totalorder %v44_v0, 512  ;;  %s112_s12 = scalar_lea.vmem %s56_s9, 64  ;;  %p117_p3 = scmp.lt.s32.totalorder %s56_s9, %s56_s9 }
  0x28   :  { %p113_p2 = scmp.ne.s32.totalorder %s56_s9, %s112_s12  ;;  %p118_p4 = scmp.lt.s32.totalorder %s112_s12, %s112_s12 }
  0x29   :  { %v43_v5 = vadd.f32 %v42_v3, %v41_v4 }
  0x2a   :  { %p119_p5 = por %p118_p4, %p117_p3 }
  0x2b   :  { %48 = vst.msk [vmem:[#allocation7] sm:$0xf] %vm46_vm0, %v43_v5 }
  0x2c   :  { %p120_p6 = pnand %p119_p5, %p113_p2 }
  0x2e   :  { %123 = shalt.err (!%p120_p6)
}
  0x2f   :  { %s124_s14 = scalar_lea.hbm %s205_s3, 64 }
  0x30   :  { %p125_p7 = scmp.ne.s32.totalorder %s205_s3, %s124_s14  ;;  %p128_p8 = scmp.lt.u32.totalorder %s124_s14, %s205_s3 }
  0x32   :  { %p130_p9 = pnand %p128_p8, %p125_p7 }
  0x34   :  { %133 = shalt.err (!%p130_p9)
}
  0x35   :  { %58 = dma.vmem_to_hbm [thread:$0]  %s56_s9, 64, %s205_s3, [#allocation4]  }
  0x36   :  { %138 = dma.done.wait [#allocation4], 64  }
  0x37   :  { %139 = vsyncadd [#allocation4], 4294967232 }
  0x38   :  { %62 = vsyncpa [#allocation3], 1 }
  0x39   :  { %63 = vsyncpa [#allocation6], 1 }
  0x3a   :  { %64 = vsyncpa [#allocation4], 1 }

</bundles_post_ra>
